<compile_context>
chip_gen: v7x
topology: tpu7x:2x2x1
jax: 0.10.0
libtpu: 0.0.40
codegen_flags: <defaults>
</compile_context>

<pallas_src>
import jax
import jax.numpy as jnp
from jax.experimental import pallas as pl
from jax.experimental.pallas import tpu as pltpu

_MAX_ROWS_PER_TILE = 2048               # >=512-row tiles already hit ~85% of HBM roofline
_TILE_VMEM_BUDGET = 24 * 1024 * 1024    # inputs (x2 buffers) + f32 temporaries per block
_F32_TEMPS_PER_ELEM = 8                 # conservative live f32 intermediates per element


def _sublane(dtype) -> int:
    """Native sublane packing for the dtype (f32: 8, bf16: 16, 8-bit: 32)."""
    itemsize = jnp.dtype(dtype).itemsize
    if itemsize >= 4:
        return 8
    if itemsize == 2:
        return 16
    return 32


def _vmem_limit_bytes() -> int:
    """Generation-aware scoped-VMEM limit (respects v7x's 64 MiB physical)."""
    try:
        cap = int(pltpu.get_tpu_info().vmem_capacity_bytes)
    except Exception:
        cap = 64 * 1024 * 1024          # conservative fallback (v7x physical per-TC)
    return int(max(32 * 1024 * 1024, min(cap - 16 * 1024 * 1024, 96 * 1024 * 1024)))


def _make_kd_kernel(inv_t: float, batch: int, bm: int, needs_row_mask: bool):
    """Build the per-tile kernel: (bm, C) logits -> (1, C) + (1, 1) partials."""

    def kernel(ys_ref, yt_ref, lane_part_ref, row_part_ref):
        ys = ys_ref[...].astype(jnp.float32) * inv_t
        yt = yt_ref[...].astype(jnp.float32) * inv_t

        if needs_row_mask:
            # Rows beyond the true batch (partial last tile) are forced to 0 so
            # student == teacher there -> exactly zero KL contribution.
            row = (jax.lax.broadcasted_iota(jnp.int32, (bm, 1), 0)
                   + pl.program_id(0) * bm)
            valid = row < batch
            ys = jnp.where(valid, ys, 0.0)
            yt = jnp.where(valid, yt, 0.0)

        # Numerically stable softmax pieces over the class (lane) axis.
        ys_shift = ys - jnp.max(ys, axis=-1, keepdims=True)
        yt_shift = yt - jnp.max(yt, axis=-1, keepdims=True)
        ys_exp = jnp.exp(ys_shift)
        yt_exp = jnp.exp(yt_shift)
        # TODO(synk): if a bundle dump shows the XLU binding for small C, offload
        # these two lane reductions to the idle MXU via
        # jnp.dot(exp_vals, jnp.ones((C, 1), jnp.float32), preferred_element_type=jnp.float32).
        ys_sum = jnp.sum(ys_exp, axis=-1, keepdims=True)
        yt_sum = jnp.sum(yt_exp, axis=-1, keepdims=True)
        inv_yt_sum = pl.reciprocal(yt_sum, approx=False)

        # Fused KL: per row,
        #   KL = sum_c[exp(yt_shift)*(yt_shift - ys_shift)] / yt_sum
        #        + log(ys_sum) - log(yt_sum)
        lane_terms = (yt_exp * (yt_shift - ys_shift)) * inv_yt_sum      # (bm, C)
        row_terms = jnp.log(ys_sum) - jnp.log(yt_sum)                   # (bm, 1)
        if needs_row_mask:
            row_terms = jnp.where(valid, row_terms, 0.0)

        # Fold the batch (sublane) axis only; keep the class axis lane-dense and
        # defer the final cross-lane reduction to the wrapper.
        lane_part_ref[0] = jnp.sum(lane_terms, axis=0, keepdims=True)   # (1, C)
        row_part_ref[0] = jnp.sum(row_terms, axis=0, keepdims=True)     # (1, 1)

    return kernel


def distill_kl_logit_stand(y_s, y_t, temp):
    """Pallas implementation of DistillKL_logit_stand.forward.

    y_s, y_t: (B, C) float logits (student / teacher), f32 or bf16.  Prefer
              feeding bf16 directly on v5e/v6e (kernel upcasts internally).
    temp:     python float distillation temperature (baked at trace time).
    Returns a float32 scalar loss.
    """
    assert y_s.shape == y_t.shape and y_s.ndim == 2
    B, C = y_s.shape
    T = float(temp)
    inv_t = 1.0 / T

    itemsize = jnp.dtype(y_s.dtype).itemsize
    sub = _sublane(y_s.dtype)

    # Largest sublane-multiple row tile whose block-dependent VMEM (2 inputs x
    # 2 pipeline buffers + ~8 live f32 temporaries per element) fits the budget.
    bytes_per_row = C * (4 * itemsize + _F32_TEMPS_PER_ELEM * 4)
    bm_cap = max(sub, (_TILE_VMEM_BUDGET // bytes_per_row) // sub * sub)
    bm_cap = min(bm_cap, _MAX_ROWS_PER_TILE)

    b_floor = (B // sub) * sub
    if b_floor == 0:
        # Tiny batch: single full-extent block (allowed even if B % 8 != 0).
        bm = B
    else:
        # Keep >=4 tiles when B allows it, so v7x's two TensorCores both get
        # work and the double-buffer pipeline has steps to overlap.
        four_tile_rows = (B + 3) // 4
        four_tile_cap = ((four_tile_rows + sub - 1) // sub) * sub
        bm = max(sub, min(bm_cap, four_tile_cap, b_floor))

    num_tiles = pl.cdiv(B, bm)
    needs_row_mask = (B % bm) != 0

    kernel = _make_kd_kernel(inv_t, B, bm, needs_row_mask)

    lane_part, row_part = pl.pallas_call(
        kernel,
        out_shape=(
            jax.ShapeDtypeStruct((num_tiles, 1, C), jnp.float32),
            jax.ShapeDtypeStruct((num_tiles, 1, 1), jnp.float32),
        ),
        grid_spec=pltpu.PrefetchScalarGridSpec(
            num_scalar_prefetch=0,
            grid=(num_tiles,),
            in_specs=[
                pl.BlockSpec((bm, C), lambda i: (i, 0)),   # y_s tile (full-extent C)
                pl.BlockSpec((bm, C), lambda i: (i, 0)),   # y_t tile (full-extent C)
            ],
            out_specs=(
                pl.BlockSpec((1, 1, C), lambda i: (i, 0, 0)),   # lane-dense partial
                pl.BlockSpec((1, 1, 1), lambda i: (i, 0, 0)),   # per-row scalar partial
            ),
        ),
        compiler_params=pltpu.CompilerParams(
            dimension_semantics=("parallel",),
            vmem_limit_bytes=_vmem_limit_bytes(),
        ),
    )(y_s, y_t)

    # reduction='batchmean' -> divide by the true batch size; then * T * T.
    return (jnp.sum(lane_part) + jnp.sum(row_part)) * jnp.float32(T * T / B)


def _reference(y_s, y_t, temp):
    T = float(temp)
    ys = y_s.astype(jnp.float32) / T
    yt = y_t.astype(jnp.float32) / T
    log_p_s = jax.nn.log_softmax(ys, axis=1)
    p_t = jax.nn.softmax(yt, axis=1)
    log_p_t = jax.nn.log_softmax(yt, axis=1)
    kl = p_t * (log_p_t - log_p_s)
    return jnp.sum(kl) / y_s.shape[0] * T * T


if __name__ == "__main__":
    key = jax.random.PRNGKey(0)
    k1, k2, k3, k4 = jax.random.split(key, 4)

    # Case 1: deliberately non-aligned shapes (B not a multiple of 8, C not a
    # multiple of 128) to exercise the partial-last-tile row-masking path.
    B, C = 12, 100
    y_s = jax.random.normal(k1, (B, C), dtype=jnp.float32)
    y_t = jax.random.normal(k2, (B, C), dtype=jnp.float32)
    temp = 4.0
    loss = jax.block_until_ready(distill_kl_logit_stand(y_s, y_t, temp))
    ref = _reference(y_s, y_t, temp)
    assert jnp.allclose(loss, ref, rtol=1e-4, atol=1e-5), (loss, ref)

    # Case 2: aligned bf16 logits (halves HBM traffic on v5e/v6e), no masking.
    B2, C2 = 32, 128
    y_s2 = jax.random.normal(k3, (B2, C2), dtype=jnp.bfloat16)
    y_t2 = jax.random.normal(k4, (B2, C2), dtype=jnp.bfloat16)
    loss2 = jax.block_until_ready(distill_kl_logit_stand(y_s2, y_t2, temp))
    ref2 = _reference(y_s2, y_t2, temp)
    assert jnp.allclose(loss2, ref2, rtol=1e-3, atol=1e-5), (loss2, ref2)

    print("KERNEL_OK")
</pallas_src>

<mosaic_0001>
module attributes {stable_mosaic.version = 11 : i64} {
  func.func @kernel(%arg0: i32, %arg1: memref<8x100xf32, #tpu.memory_space<vmem>>, %arg2: memref<8x100xf32, #tpu.memory_space<vmem>>, %arg3: memref<1x1x100xf32, #tpu.memory_space<vmem>>, %arg4: memref<1x1x1xf32, #tpu.memory_space<vmem>>) attributes {dimension_semantics = [#tpu.dimension_semantics<parallel>], iteration_bounds = array<i64: 2>, scalar_prefetch = 0 : i64, scratch_operands = 0 : i64, tpu.core_type = #tpu.core_type<tc>, window_params = [{transform_indices = @transform_0, window_bounds = array<i64: 8, 100>}, {transform_indices = @transform_1, window_bounds = array<i64: 8, 100>}, {transform_indices = @transform_2, window_bounds = array<i64: 1, 1, 100>}, {transform_indices = @transform_3, window_bounds = array<i64: 1, 1, 1>}]} {
    %c0 = arith.constant 0 : index
    %c0_0 = arith.constant 0 : index
    %0 = vector.load %arg1[%c0, %c0_0] : memref<8x100xf32, #tpu.memory_space<vmem>>, vector<8x100xf32>
    %cst = arith.constant 2.500000e-01 : f32
    %1 = vector.broadcast %cst : f32 to vector<8x100xf32>
    %2 = arith.mulf %0, %1 : vector<8x100xf32>
    %c0_1 = arith.constant 0 : index
    %c0_2 = arith.constant 0 : index
    %3 = vector.load %arg2[%c0_1, %c0_2] : memref<8x100xf32, #tpu.memory_space<vmem>>, vector<8x100xf32>
    %cst_3 = arith.constant 2.500000e-01 : f32
    %4 = vector.broadcast %cst_3 : f32 to vector<8x100xf32>
    %5 = arith.mulf %3, %4 : vector<8x100xf32>
    %6 = tpu.iota {dimensions = array<i32: 0>} : vector<8x1xi32>
    %c8_i32 = arith.constant 8 : i32
    %7 = arith.muli %arg0, %c8_i32 : i32
    %8 = vector.broadcast %7 : i32 to vector<8x1xi32>
    %9 = arith.addi %6, %8 : vector<8x1xi32>
    %c12_i32 = arith.constant 12 : i32
    %10 = vector.broadcast %c12_i32 : i32 to vector<8x1xi32>
    %11 = arith.cmpi slt, %9, %10 : vector<8x1xi32>
    %cst_4 = arith.constant 0.000000e+00 : f32
    %12 = vector.shape_cast %11 : vector<8x1xi1> to vector<8x1xi1>
    %13 = vector.broadcast %12 : vector<8x1xi1> to vector<8x100xi1>
    %14 = vector.broadcast %cst_4 : f32 to vector<8x100xf32>
    %15 = arith.select %13, %2, %14 : vector<8x100xi1>, vector<8x100xf32>
    %cst_5 = arith.constant 0.000000e+00 : f32
    %16 = vector.shape_cast %11 : vector<8x1xi1> to vector<8x1xi1>
    %17 = vector.broadcast %16 : vector<8x1xi1> to vector<8x100xi1>
    %18 = vector.broadcast %cst_5 : f32 to vector<8x100xf32>
    %19 = arith.select %17, %5, %18 : vector<8x100xi1>, vector<8x100xf32>
    %cst_6 = arith.constant dense<0xFF800000> : vector<8xf32>
    %20 = vector.multi_reduction <maximumf>, %15, %cst_6 [1] : vector<8x100xf32> to vector<8xf32>
    %21 = vector.shape_cast %20 : vector<8xf32> to vector<8x1xf32>
    %22 = vector.broadcast %21 : vector<8x1xf32> to vector<8x100xf32>
    %23 = arith.subf %15, %22 : vector<8x100xf32>
    %cst_7 = arith.constant dense<0xFF800000> : vector<8xf32>
    %24 = vector.multi_reduction <maximumf>, %19, %cst_7 [1] : vector<8x100xf32> to vector<8xf32>
    %25 = vector.shape_cast %24 : vector<8xf32> to vector<8x1xf32>
    %26 = vector.broadcast %25 : vector<8x1xf32> to vector<8x100xf32>
    %27 = arith.subf %19, %26 : vector<8x100xf32>
    %28 = math.exp %23 : vector<8x100xf32>
    %29 = math.exp %27 : vector<8x100xf32>
    %cst_8 = arith.constant dense<0.000000e+00> : vector<8xf32>
    %30 = vector.multi_reduction <add>, %28, %cst_8 [1] : vector<8x100xf32> to vector<8xf32>
    %31 = vector.shape_cast %30 : vector<8xf32> to vector<8x1xf32>
    %cst_9 = arith.constant dense<0.000000e+00> : vector<8xf32>
    %32 = vector.multi_reduction <add>, %29, %cst_9 [1] : vector<8x100xf32> to vector<8xf32>
    %33 = vector.shape_cast %32 : vector<8xf32> to vector<8x1xf32>
    %34 = tpu.reciprocal %33 : vector<8x1xf32> -> vector<8x1xf32>
    %35 = arith.subf %27, %23 : vector<8x100xf32>
    %36 = arith.mulf %29, %35 : vector<8x100xf32>
    %37 = vector.broadcast %34 : vector<8x1xf32> to vector<8x100xf32>
    %38 = arith.mulf %36, %37 : vector<8x100xf32>
    %39 = math.log %31 : vector<8x1xf32>
    %40 = math.log %33 : vector<8x1xf32>
    %41 = arith.subf %39, %40 : vector<8x1xf32>
    %cst_10 = arith.constant 0.000000e+00 : f32
    %42 = vector.broadcast %cst_10 : f32 to vector<8x1xf32>
    %43 = arith.select %11, %41, %42 : vector<8x1xi1>, vector<8x1xf32>
    %cst_11 = arith.constant dense<0.000000e+00> : vector<100xf32>
    %44 = vector.multi_reduction <add>, %38, %cst_11 [0] : vector<8x100xf32> to vector<100xf32>
    %45 = vector.shape_cast %44 : vector<100xf32> to vector<1x100xf32>
    %c0_12 = arith.constant 0 : index
    %c0_13 = arith.constant 0 : index
    %c0_14 = arith.constant 0 : index
    %46 = vector.load %arg3[%c0_12, %c0_13, %c0_14] : memref<1x1x100xf32, #tpu.memory_space<vmem>>, vector<1x1x100xf32>
    %47 = vector.shape_cast %46 : vector<1x1x100xf32> to vector<1x100xf32>
    %48 = vector.shape_cast %45 : vector<1x100xf32> to vector<1x1x100xf32>
    tpu.vector_store %arg3[%c0_12, %c0_13, %c0_14], %48 {strides = array<i32>} : memref<1x1x100xf32, #tpu.memory_space<vmem>>, vector<1x1x100xf32>,
    %cst_15 = arith.constant dense<0.000000e+00> : vector<1xf32>
    %49 = vector.multi_reduction <add>, %43, %cst_15 [0] : vector<8x1xf32> to vector<1xf32>
    %50 = vector.shape_cast %49 : vector<1xf32> to vector<1x1xf32>
    %c0_16 = arith.constant 0 : index
    %c0_17 = arith.constant 0 : index
    %c0_18 = arith.constant 0 : index
    %51 = vector.load %arg4[%c0_16, %c0_17, %c0_18] : memref<1x1x1xf32, #tpu.memory_space<vmem>>, vector<1x1x1xf32>
    %52 = vector.shape_cast %51 : vector<1x1x1xf32> to vector<1x1xf32>
    %53 = vector.shape_cast %50 : vector<1x1xf32> to vector<1x1x1xf32>
    tpu.vector_store %arg4[%c0_16, %c0_17, %c0_18], %53 {strides = array<i32>} : memref<1x1x1xf32, #tpu.memory_space<vmem>>, vector<1x1x1xf32>,
    return
  }
  func.func @transform_0(%arg0: i32) -> (i32, i32) {
    %c0_i32 = arith.constant 0 : i32
    %c0_i32_0 = arith.constant 0 : i32
    return %arg0, %c0_i32 : i32, i32
  }
  func.func @transform_1(%arg0: i32) -> (i32, i32) {
    %c0_i32 = arith.constant 0 : i32
    %c0_i32_0 = arith.constant 0 : i32
    return %arg0, %c0_i32 : i32, i32
  }
  func.func @transform_2(%arg0: i32) -> (i32, i32, i32) {
    %c0_i32 = arith.constant 0 : i32
    %c0_i32_0 = arith.constant 0 : i32
    %c0_i32_1 = arith.constant 0 : i32
    return %arg0, %c0_i32, %c0_i32_0 : i32, i32, i32
  }
  func.func @transform_3(%arg0: i32) -> (i32, i32, i32) {
    %c0_i32 = arith.constant 0 : i32
    %c0_i32_0 = arith.constant 0 : i32
    %c0_i32_1 = arith.constant 0 : i32
    return %arg0, %c0_i32, %c0_i32_0 : i32, i32, i32
  }
}

</mosaic_0001>

<bundles_post_ra>
// kernel: tpu_custom_call.1
= control target key start
LH: loop header
LB: loop body
LE: loop exit
PB: predicated region body
PF: predicated region fallthrough
CT: control target
= control target key end

     0   :  { %9 = vsyncpa [#allocation3], 0  ;;  %s881_s0 = inlined_call_operand.hbm [shape: f32[12,100], index: 0, kind: input, shape index: {}]   ;;  %s882_s1 = inlined_call_operand.hbm [shape: f32[12,100], index: 1, kind: input, shape index: {}]   ;;  %s883_s2 = inlined_call_operand.hbm [shape: f32[2,1,100], index: 2, kind: output, shape index: {0}]   ;;  %s884_s3 = inlined_call_operand.vmem [shape: f32[2,1,1], index: 3, kind: output, shape index: {1}]  }
   0x1   :  { %11 = vsyncpa [#allocation3 + $0x1], 0 }
   0x2   :  { %12 = vsyncpa [#allocation6], 0 }
   0x3   :  { %14 = vsyncpa [#allocation6 + $0x1], 0 }
   0x4   :  { %15 = vsyncpa [#allocation4], 0 }
   0x5   :  { %17 = vsyncpa [#allocation4 + $0x1], 0  ;;  %s648_s12 = smov 0   ;;  %s650_s13 = smov 0  }
   0x6   :  { %s652_s14 = smov 0   ;;  %s654_s15 = smov 0  }
   0x7 LB: > { %s669_s16 = sadd.s32 4294967295, %s623_s15   ;;  %s418_s17 = sadd.s32 4294967294, %s623_s15   ;;  %s623_s15 = sphi %s654_s15, %s903_s15   ;;  %s619_s14 = sphi %s652_s14, %s902_s14   ;;  %s615_s13 = sphi %s650_s13, %s901_s13   ;;  %s611_s12 = sphi %s648_s12, %s900_s12  }
   0x8   : > { %s673_s18 = sadd.s32 1, %s623_s15   ;;  %s30_s19 = sadd.s32 1, %s619_s14 }
   0x9   : > { %s27_s20 = ssub.s32 %s623_s15, %s673_s18  ;;  %p37_p0 = scmp.ne.s32.totalorder %s619_s14, %s615_s13 }
   0xa   : > { %p28_p1 = scmp.eq.s32.totalorder %s27_s20, 0  ;;  %p38_p2 = scmp.eq.s32.totalorder %s623_s15, 0 }
   0xb   : > { %p43_p3 = scmp.ne.s32.totalorder %s615_s13, %s611_s12  ;;  %p44_p4 = scmp.eq.s32.totalorder %s669_s16, 0 }
   0xc   : > { %s685_s21 = scalar_select %p28_p1, %s619_s14, %s30_s19  }
   0xd   : > { %p687_p5 = por %p38_p2, %p37_p0  ;;  %p691_p6 = por %p44_p4, %p43_p3 }
   0xe   : > { %p93_p7 = scmp.eq.s32.totalorder %s669_s16, 1  ;;  %p99_p8 = scmp.eq.s32.totalorder %s418_s17, 1 }
   0xf   : > { %s888_s23 = scalar_select %p691_p6, 1, 0 }
  0x10   : > { %p449_p10 = scmp.lt.s32.totalorder %s623_s15, 2  ;;  %p698_p11 = por %p93_p7, %p37_p0 }
  0x11   : > { %p702_p12 = por %p99_p8, %p43_p3  ;;  %s707_s26 = sand.u32 1, %s619_s14  }
  0x12   : > { %s889_s24 = scalar_select %p698_p11, 1, 0 }
  0x13   : > { %s890_s25 = scalar_select %p702_p12, 1, 0 }
  0x14   : > { %s422_s27 = sshll.u32 %s623_s15, 7  ;;  %s421_s28 = sshll.u32 %s707_s26, 3 }
  0x15   : > { %s716_s4 = scalar_lea.hbm %s881_s0, %s422_s27  ;;  %s149_s5 = scalar_lea.vmem [#allocation2], %s421_s28 }
  0x16   : > { %s156_s6 = sshll.u32 %s149_s5, 4  ;;  %p722_p13 = pnand %p449_p10, %p687_p5  ;;  %s726_s6 = int_to_ptr.vmem [resolvable:$true] %s156_s6 }
  0x17   : > { %s146_s8 = scalar_lea.sflag [#allocation3], %s707_s26  ;;  %s493_s9 = scalar_lea.hbm %s716_s4, 128 }
  0x18   : > { %p494_p2 = scmp.ne.s32.totalorder %s716_s4, %s493_s9  ;;  %p495_p3 = pneg %p722_p13 }
  0x19   : > { %s498_s17 = scalar_lea.hbm %s881_s0, 256  ;;  %p499_p5 = scmp.lt.u32.totalorder %s716_s4, %s881_s0 }
  0x1a   : > { %p496_p4 = pnand %p495_p3, %p494_p2  ;;  %p500_p8 = scmp.lt.u32.totalorder %s498_s17, %s493_s9 }
  0x1b   : > { %p502_p9 = scmp.lt.u32.totalorder %s493_s9, %s716_s4 }
  0x1c   : > { %p497_p7 = pneg %p496_p4  ;;  %p501_p10 = por %p500_p8, %p499_p5 }
  0x1e   : > { %p503_p0 = por %p502_p9, %p501_p10 }
  0x20   : > { %p504_p1 = pnand %p503_p0, %p497_p7 }
  0x22   : > { %507 = shalt.err (!%p504_p1)
}
  0x23   : > { %s508_s22 = scalar_lea.vmem %s726_s6, 128  ;;  %s625_s29 = smov [#allocation2]  }
  0x24   : > { %p509_p2 = scmp.ne.s32.totalorder %s726_s6, %s508_s22  ;;  %s513_s30 = sshll.u32 %s625_s29, 4  ;;  %s514_s30 = int_to_ptr.vmem [resolvable:$false] %s513_s30 }
  0x25   : > { %s515_s5 = scalar_lea.vmem %s514_s30, 256  ;;  %p516_p11 = scmp.lt.s32.totalorder %s726_s6, %s514_s30 }
  0x26   : > { %p511_p4 = pnand %p509_p2, %p495_p3  ;;  %p517_p5 = scmp.lt.s32.totalorder %s515_s5, %s508_s22 }
  0x28   : > { %p512_p12 = pneg %p511_p4  ;;  %p518_p8 = por %p517_p5, %p516_p11 }
  0x2a   : > { %p519_p9 = pnand %p518_p8, %p512_p12 }
  0x2c   : > { %522 = shalt.err (!%p519_p9)
}
  0x2d   : > { %441 = dma.hbm_to_vmem [thread:$0]  (!%p722_p13), %s716_s4, 128, %s726_s6, %s146_s8  }
  0x2e   : > { %p892_p0 = scmp.lt.s32.totalorder %s623_s15, 3  ;;  %p893_p1 = scmp.ge.s32.totalorder %s623_s15, 1 }
  0x2f   : > { %s769_s17 = scalar_lea.hbm %s882_s1, %s422_s27  ;;  %s167_s19 = scalar_lea.vmem [#allocation5], %s421_s28 }
  0x30   : > { %p760_p7 = pnand %p893_p1, %p892_p0  ;;  %s174_s20 = sshll.u32 %s167_s19, 4  ;;  %s175_s20 = int_to_ptr.vmem [resolvable:$true] %s174_s20 }
  0x31   : > { %s164_s4 = scalar_lea.sflag [#allocation6], %s707_s26  ;;  %s523_s6 = scalar_lea.hbm %s769_s17, 128 }
  0x32   : > { %s894_s9 = scalar_select %p760_p7, 1, 0 }
  0x33   : > { %p524_p11 = scmp.ne.s32.totalorder %s769_s17, %s523_s6  ;;  %s528_s27 = scalar_lea.hbm %s882_s1, 256 }
  0x34   : > { %p529_p2 = scmp.lt.u32.totalorder %s769_s17, %s882_s1  ;;  %p530_p4 = scmp.lt.u32.totalorder %s528_s27, %s523_s6 }
  0x35   : > { %p526_p12 = pnand %p524_p11, %p495_p3  ;;  %p532_p8 = scmp.lt.u32.totalorder %s523_s6, %s769_s17 }
  0x36   : > { %p531_p5 = por %p530_p4, %p529_p2 }
  0x37   : > { %p527_p10 = pneg %p526_p12 }
  0x38   : > { %p533_p9 = por %p532_p8, %p531_p5 }
  0x3a   : > { %p534_p0 = pnand %p533_p9, %p527_p10 }
  0x3c   : > { %537 = shalt.err (!%p534_p0)
}
  0x3d   : > { %s538_s26 = scalar_lea.vmem %s175_s20, 128  ;;  %s626_s28 = smov [#allocation5]  }
  0x3e   : > { %p539_p1 = scmp.ne.s32.totalorder %s175_s20, %s538_s26  ;;  %s543_s5 = sshll.u32 %s626_s28, 4  ;;  %s544_s5 = int_to_ptr.vmem [resolvable:$false] %s543_s5 }
  0x3f   : > { %s545_s10 = scalar_lea.vmem %s544_s5, 256  ;;  %p546_p6 = scmp.lt.s32.totalorder %s175_s20, %s544_s5 }
  0x40   : > { %p541_p11 = pnand %p539_p1, %p495_p3  ;;  %p547_p7 = scmp.lt.s32.totalorder %s545_s10, %s538_s26 }
  0x42   : > { %p542_p12 = pneg %p541_p11  ;;  %p548_p2 = por %p547_p7, %p546_p6 }
  0x44   : > { %p549_p4 = pnand %p548_p2, %p542_p12 }
  0x46   : > { %552 = shalt.err (!%p549_p4)
}
  0x47   : > { %444 = dma.hbm_to_vmem [thread:$0]  (!%p722_p13), %s769_s17, 128, %s175_s20, %s164_s4  }
  0x48   : > { %p895_p10 = scmp.ne.s32.totalorder %s894_s9, 0 }
  0x49   : > { %s796_s11 = sand.u32 (!%p895_p10), 1, %s615_s13   ;;  %p896_p3 = scmp.ne.s32.totalorder (!%p895_p10), %s888_s23, 0 }
  0x4a   : > { %183 = sbr.rel (%p895_p10) target bundleno = 438 (0x1b6), region = 28  ;;  %s426_s19 = sshll.u32 (!%p895_p10), %s796_s11, 3 }
  0x4b   : > { %s186_s6 = scalar_lea.sflag (!%p895_p10), [#allocation3], %s796_s11  ;;  %s189_s8 = scalar_lea.vmem (!%p895_p10), [#allocation2], %s426_s19 }
  0x51   : > { %598 = dma.done.wait (%p896_p3), %s186_s6, 128  }
  0x52   : > { %600 = vsyncadd (%p896_p3), %s186_s6, 4294967168  ;;  %s195_s7 = scalar_lea.sflag [#allocation6], %s796_s11  ;;  %s198_s17 = scalar_lea.vmem [#allocation5], %s426_s19 }
  0x53   : > { %602 = dma.done.wait (%p896_p3), %s195_s7, 128  }
  0x54   : > { %604 = vsyncadd (%p896_p3), %s195_s7, 4294967168  ;;  %v235_v0 = vlaneseq  ;;  %s428_s9 = sshll.u32 %s669_s16, 3  ;;  %v231_v4 = vld [vmem:[%s189_s8] sm:$0xff]  ;;  %v233_v5 = vld [vmem:[%s198_s17] sm:$0xff]  ;;  %vm245_vm1 = vcmask 818176   ;;  %p228_p6 = scmp.lt.s32.totalorder %s669_s16, 1 }
  0x55   : > { %v238_v1 = vstv %s428_s9  ;;  %v232_v6 = vmul.f32 0.25, %v231_v4  ;;  %v234_v7 = vmul.f32 0.25, %v233_v5  ;;  %s429_s23 = sshll.u32 %s669_s16, 4  ;;  %s222_s20 = scalar_lea.vmem [#allocation7], %s796_s11  ;;  %vm281_vm2 = vcmask 811008  }
  0x56   : > { %v236_v2 = vshrl.u32 %v235_v0, 7  ;;  %s307_s4 = sshll.u32 %s222_s20, 4  ;;  %s905_s16 = smov (!%p228_p6, %s669_s16), 1  ;;  %vm289_vm3 = vcmask 0   ;;  %s829_s4 = int_to_ptr.vmem [resolvable:$true] %s307_s4 }
  0x57   : > { %s827_s29 = scalar_lea.hbm %s883_s2, %s429_s23  ;;  %s230_s28 = scalar_lea.vmem %s884_s3, %s905_s16 }
  0x58   : > { %v239_v3 = vadd.s32 %v238_v1, %v236_v2  ;;  %s292_s5 = scalar_lea.sflag [#allocation4], %s796_s11  ;;  %s553_s10 = scalar_lea.vmem %s829_s4, 16 }
  0x59   : > { %p554_p13 = scmp.ne.s32.totalorder %s829_s4, %s553_s10  ;;  %p897_p7 = scmp.ne.s32.totalorder %s889_s24, 0 }
  0x5a   : > { %vm240_vm0 = vcmp.lt.s32.totalorder %v239_v3, 12  ;;  %s627_s19 = smov [#allocation7]  }
  0x5b   : > { %v243_v8 = vsel %vm240_vm0, %v232_v6, 0.0  ;;  %v244_v9 = vsel %vm240_vm0, %v234_v7, 0.0  ;;  %p555_p5 = pnand %p554_p13, %p897_p7  ;;  %s557_s6 = sshll.u32 %s627_s19, 4  ;;  %s558_s6 = int_to_ptr.vmem [resolvable:$false] %s557_s6 }
  0x5c   : > { %v246_v10 = vsel %vm245_vm1, %v243_v8, -inf  ;;  %v250_v11 = vsel %vm245_vm1, %v244_v9, -inf  ;;  %s559_s8 = scalar_lea.vmem %s558_s6, 32  ;;  %p560_p9 = scmp.lt.s32.totalorder %s829_s4, %s558_s6 }
  0x5d   : > { %247 = vmax.xlane.f32.xlu0 %v246_v10  ;;  %p556_p8 = pneg %p555_p5  ;;  %p561_p0 = scmp.lt.s32.totalorder %s559_s8, %s553_s10 }
  0x5f   : > { %p562_p1 = por %p561_p0, %p560_p9 }
  0x61   : > { %251 = vmax.xlane.f32.xlu0 %v250_v11  ;;  %p563_p11 = pnand %p562_p1, %p556_p8 }
  0xea   : > { %v248_v12 = vpop.xlane.xlu0 %247 }
  0xeb   : > { %v249_v13 = vsub.f32 %v243_v8, %v248_v12 }
  0xed   : > { %v254_v14 = vmul.f32 1.442695, %v249_v13 }
  0xee   : > { %v252_v15 = vpop.xlane.xlu0 %251 }
  0xef   : > { %483 = vpow2.f32 %v254_v14  ;;  %v253_v16 = vsub.f32 %v244_v9, %v252_v15 }
  0xf1   : > { %v256_v17 = vmul.f32 1.442695, %v253_v16  ;;  %v265_v18 = vsub.f32 %v253_v16, %v249_v13 }
  0xf3   : > { %485 = vpow2.f32 %v256_v17 }
  0xf9   : > { %v484_v19 = vpop.eup %483 }
  0xfa   : > { %v258_v20 = vsel %vm245_vm1, %v484_v19, 0.0 }
  0xfb   : > { %259 = vadd.xlane.f32.xlu1 %v258_v20 }
  0xfd   : > { %v486_v21 = vpop.eup %485 }
  0xfe   : > { %v266_v22 = vmul.f32 %v486_v21, %v265_v18  ;;  %v261_v23 = vsel %vm245_vm1, %v486_v21, 0.0 }
  0xff   : > { %262 = vadd.xlane.f32.xlu1 %v261_v23 }
 0x188   : > { %v260_v24 = vpop.xlane.xlu1 %259 }
 0x189   : > { %487 = vlog2.f32 %v260_v24 }
 0x18c   : > { %v263_v25 = vpop.xlane.xlu1 %262 }
 0x18d   : > { %489 = vrcp.f32 %v263_v25 }
 0x18e   : > { %491 = vlog2.f32 %v263_v25 }
 0x193   : > { %v488_v26 = vpop.eup %487 }
 0x194   : > { %v269_v30 = vmul.f32 0.6931472, %v488_v26 }
 0x197   : > { %v490_v27 = vpop.eup %489 }
 0x198   : > { %v492_v28 = vpop.eup %491  ;;  %v267_v29 = vmul.f32 %v490_v27, %v266_v22 }
 0x199   : > { %v271_v31 = vmul.f32 0.6931472, %v492_v28 }
 0x19a   : > { %v274_v32 = vsel %vm245_vm1, %v267_v29, 0.0 }
 0x19b   : > { %v272_v33 = vsub.f32 %v269_v30, %v271_v31  ;;  %v275_v34 = vrot.slane %v274_v32, 4 }
 0x19d   : > { %v273_v35 = vsel %vm240_vm0, %v272_v33, 0.0  ;;  %v276_v36 = vadd.f32 %v275_v34, %v274_v32 }
 0x19e   : > { %v283_v37 = vrot.slane %v273_v35, 4 }
 0x19f   : > { %v277_v38 = vrot.slane %v276_v36, 2 }
 0x1a0   : > { %v284_v39 = vadd.f32 %v283_v37, %v273_v35 }
 0x1a1   : > { %v278_v40 = vadd.f32 %v277_v38, %v276_v36 }
 0x1a2   : > { %v285_v41 = vrot.slane %v284_v39, 2 }
 0x1a3   : > { %v279_v42 = vrot.slane %v278_v40, 1 }
 0x1a4   : > { %v286_v43 = vadd.f32 %v285_v41, %v284_v39 }
 0x1a5   : > { %v280_v44 = vadd.f32 %v279_v42, %v278_v40 }
 0x1a6   : > { %v287_v45 = vrot.slane %v286_v43, 1 }
 0x1a7   : > { %282 = vst.msk [vmem:[%s222_s20] sm:$0x1] %vm281_vm2, %v280_v44 }
 0x1a8   : > { %v288_v46 = vadd.f32 %v287_v45, %v286_v43 }
 0x1a9   : > { %566 = shalt.err (!%p563_p11)
}
 0x1aa   : > { %s567_s11 = scalar_lea.hbm %s827_s29, 16  ;;  %s571_s9 = scalar_lea.hbm %s883_s2, 32 }
 0x1ab   : > { %p568_p12 = scmp.ne.s32.totalorder %s827_s29, %s567_s11  ;;  %p572_p10 = scmp.lt.u32.totalorder %s827_s29, %s883_s2 }
 0x1ac   : > { %p573_p3 = scmp.lt.u32.totalorder %s571_s9, %s567_s11  ;;  %p575_p13 = scmp.lt.u32.totalorder %s567_s11, %s827_s29 }
 0x1ad   : > { %p569_p2 = pnand %p568_p12, %p897_p7 }
 0x1ae   : > { %p574_p6 = por %p573_p3, %p572_p10 }
 0x1af   : > { %p570_p4 = pneg %p569_p2 }
 0x1b0   : > { %p576_p5 = por %p575_p13, %p574_p6 }
 0x1b2   : > { %p577_p8 = pnand %p576_p5, %p570_p4 }
 0x1b4   : > { %580 = shalt.err (!%p577_p8)
}
 0x1b5   : > { %436 = dma.vmem_to_hbm [thread:$0]  (%p897_p7), %s829_s4, 16, %s827_s29, %s292_s5   ;;  %290 = vst.msk [vmem:[%s230_s28] sm:$0x1] %vm289_vm3, %v288_v46 }
 0x1b6 PF: > { %s322_s30 = sand.u32 1, %s611_s12   ;;  %p898_p9 = scmp.ne.s32.totalorder %s890_s25, 0 }
 0x1b7   : > { %p899_p0 = scmp.ge.s32.totalorder %s623_s15, 2  ;;  %s323_s26 = scalar_lea.sflag [#allocation4], %s322_s30 }
 0x1b9   : > { %p446_p1 = pnand %p899_p0, %p898_p9 }
 0x1bb   : > { %606 = dma.done.wait (!%p446_p1), %s323_s26, 16  }
 0x1bc   : > { %608 = vsyncadd (!%p446_p1), %s323_s26, 4294967280  ;;  %p20_p7 = scmp.ge.s32.totalorder %s673_s18, 4   ;;  %s900_s12 = smov %s615_s13 }
 0x1bd   : > { %s901_s13 = smov %s619_s14  ;;  %s902_s14 = smov %s685_s21 }
 0x1be   : > { %s903_s15 = smov %s673_s18  ;;  %22 = sbr.rel (!%p20_p7) target bundleno = 7 (0x7), region = 98 }
 0x1c5   :  { %333 = vsyncpa [#allocation3], 1 }
 0x1c6   :  { %335 = vsyncpa [#allocation3 + $0x1], 1 }
 0x1c7   :  { %336 = vsyncpa [#allocation6], 1 }
 0x1c8   :  { %338 = vsyncpa [#allocation6 + $0x1], 1 }
 0x1c9   :  { %339 = vsyncpa [#allocation4], 1 }
 0x1ca   :  { %341 = vsyncpa [#allocation4 + $0x1], 1 }

</bundles_post_ra>
